<compile_context>
chip_gen: v7x
topology: tpu7x:2x2x1
jax: 0.10.0
libtpu: 0.0.40
codegen_flags: <defaults>
</compile_context>

<pallas_src>
import functools
import math

import numpy as np

import jax
import jax.numpy as jnp
from jax.experimental import pallas as pl
from jax.experimental.pallas import tpu as pltpu


# ---------------------------------------------------------------------------
# Generation-aware VMEM configuration
# ---------------------------------------------------------------------------
@functools.lru_cache(maxsize=1)
def _vmem_config():
    """Returns (per-kernel tile byte budget, vmem_limit_bytes)."""
    cap = 64 * 2 ** 20
    try:
        cap = int(getattr(pltpu.get_tpu_info(), "vmem_capacity_bytes", cap))
    except Exception:
        pass
    if cap >= 100 * 2 ** 20:          # v5e / v6e class: 128 MiB VMEM per core
        return 20 * 2 ** 20, 64 * 2 ** 20
    return 10 * 2 ** 20, 32 * 2 ** 20  # v7x class: 64 MiB VMEM per core


def _sublane_pack(dtype):
    # sublane packing: 8 for f32, 16 for bf16/f16, 32 for int8/fp8
    return max(1, 32 // jnp.dtype(dtype).itemsize)


def _round_up(x, m):
    return ((x + m - 1) // m) * m


# ---------------------------------------------------------------------------
# Pallas kernels
# ---------------------------------------------------------------------------
def _resize_kernel(x_ref, wh_ref, wwt_ref, o_ref, *, compute_dtype):
    """Separable bilinear resize of a TB-image block via MXU matmuls.

    x_ref:   (TB, H_in, W_in)
    wh_ref:  (H_out, H_in)    row-interp matrix (compute dtype)
    wwt_ref: (W_in,  W_out)   column-interp matrix, pre-transposed (compute dtype)
    o_ref:   (TB, H_out, W_out)
    """
    TB, H_in, W_in = x_ref.shape
    H_out = wh_ref.shape[0]
    W_out = wwt_ref.shape[1]
    cd = compute_dtype
    pack = _sublane_pack(cd)

    x = x_ref[...].astype(cd)
    wwt = wwt_ref[...]
    wh = wh_ref[...]

    # --- W contraction -----------------------------------------------------
    if H_in % pack == 0:
        # Layout-free collapse of (TB, H_in) -> one large 2D MXU matmul.
        xw = jnp.dot(x.reshape(TB * H_in, W_in), wwt,
                     preferred_element_type=jnp.float32)
        xw = xw.astype(cd).reshape(TB, H_in, W_out)
    else:
        # Unaligned sublane dim: batched matmul, no relayout copies.
        xw = jax.lax.dot_general(
            x, jnp.broadcast_to(wwt, (TB, W_in, W_out)),
            (((2,), (1,)), ((0,), (0,))),
            preferred_element_type=jnp.float32).astype(cd)

    # --- H contraction: one batched dot over the TB images ------------------
    # Both operands stay in the compute dtype (bf16 fast path when applicable);
    # accumulation is f32 via preferred_element_type.
    wh_b = jnp.broadcast_to(wh, (TB, H_out, H_in))
    out = jax.lax.dot_general(
        wh_b, xw, (((2,), (1,)), ((0,), (0,))),
        preferred_element_type=jnp.float32)
    o_ref[...] = out.astype(o_ref.dtype)


def _channel_map_kernel(x_ref, w_ref, b_ref, o_ref):
    """1x1 conv in NCHW-native layout: (Cout, Cin) @ (Cin, TS) spatial tile."""
    acc = jnp.dot(w_ref[...], x_ref[0], preferred_element_type=jnp.float32)
    acc = acc + b_ref[...]          # (Cout, 1) f32, broadcast along lanes
    o_ref[0] = acc.astype(o_ref.dtype)


# ---------------------------------------------------------------------------
# Tiling heuristics
# ---------------------------------------------------------------------------
def _pick_batch_tile(B, H_in, W_in, H_out, W_out, x_item, cd_item, budget):
    """Images per grid step for the resize kernel (budget-complete estimate)."""
    per_img = (
        H_in * W_in * (2 * x_item + cd_item)     # double-buffered input + cast copy
        + H_out * W_out * (2 * x_item + 4)       # double-buffered output + f32 result
        + H_in * W_out * (4 + cd_item)           # f32 intermediate + cast copy
        + H_out * H_in * cd_item                 # broadcast Wh copy (batched dot)
    )
    fixed = (H_out * H_in + W_in * W_out) * cd_item * 2   # weight matrices
    cap = max(1, int((budget - fixed) // max(per_img, 1)))
    cap = min(cap, 32, B)          # bound unrolled batched-matmul count / code size
    if B >= 4:
        # >= 4 grid steps total => >= 2 pipelined steps per TensorCore on
        # dual-core parts (v7x), and enough steps to hide the block DMA on 1-TC chips.
        cap = min(cap, max(1, B // 4))
    tb = max(cap, 1)
    while B % tb != 0:
        tb -= 1
    return tb


def _pick_spatial_tile(hw, cin, cout, itemsize, budget):
    """Spatial tile for the 1x1 conv (accounts for sublane padding)."""
    pack = max(1, 32 // itemsize)
    cin_p = _round_up(cin, pack)
    cout_p = _round_up(cout, pack)
    per_col = (cin_p + cout_p) * itemsize * 2 + cout_p * 4   # dbl-buffered io + f32 acc
    cap = max(128, budget // max(per_col, 1))
    if hw <= cap:
        return hw
    t = (cap // 128) * 128
    while t >= 128:       # tile must be a multiple of 128 lanes and divide hw
        if hw % t == 0:
            return t
        t -= 128
    return hw             # fallback: single block over the spatial axis


# ---------------------------------------------------------------------------
# pallas_call wrappers
# ---------------------------------------------------------------------------
def _resize_pallas(x3, wh, wwt, compute_dtype):
    """x3: (B, H_in, W_in) -> (B, H_out, W_out)."""
    B, H_in, W_in = x3.shape
    H_out = wh.shape[0]
    W_out = wwt.shape[1]
    budget, vmem_limit = _vmem_config()
    TB = _pick_batch_tile(B, H_in, W_in, H_out, W_out,
                          jnp.dtype(x3.dtype).itemsize,
                          jnp.dtype(compute_dtype).itemsize, budget)
    kernel = functools.partial(_resize_kernel, compute_dtype=jnp.dtype(compute_dtype))
    return pl.pallas_call(
        kernel,
        out_shape=jax.ShapeDtypeStruct((B, H_out, W_out), x3.dtype),
        grid=(B // TB,),
        in_specs=[
            pl.BlockSpec((TB, H_in, W_in), lambda i: (i, 0, 0)),
            pl.BlockSpec((H_out, H_in), lambda i: (0, 0)),
            pl.BlockSpec((W_in, W_out), lambda i: (0, 0)),
        ],
        out_specs=pl.BlockSpec((TB, H_out, W_out), lambda i: (i, 0, 0)),
        compiler_params=pltpu.CompilerParams(
            dimension_semantics=("parallel",),
            vmem_limit_bytes=vmem_limit,
        ),
    )(x3, wh, wwt)


def _channel_map_pallas(x3, w, b):
    """NCHW-native 1x1 conv. x3: (N, Cin, HW), w: (Cout, Cin), b: (Cout, 1) f32."""
    N, Cin, HW = x3.shape
    Cout = w.shape[0]
    budget, vmem_limit = _vmem_config()
    TS = _pick_spatial_tile(HW, Cin, Cout, jnp.dtype(x3.dtype).itemsize, budget)
    return pl.pallas_call(
        _channel_map_kernel,
        out_shape=jax.ShapeDtypeStruct((N, Cout, HW), x3.dtype),
        grid=(N, HW // TS),
        in_specs=[
            pl.BlockSpec((1, Cin, TS), lambda n, t: (n, 0, t)),
            pl.BlockSpec((Cout, Cin), lambda n, t: (0, 0)),
            pl.BlockSpec((Cout, 1), lambda n, t: (0, 0)),
        ],
        out_specs=pl.BlockSpec((1, Cout, TS), lambda n, t: (n, 0, t)),
        compiler_params=pltpu.CompilerParams(
            dimension_semantics=("parallel", "parallel"),
            vmem_limit_bytes=vmem_limit,
        ),
    )(x3, w, b)


# ---------------------------------------------------------------------------
# Interpolation-matrix construction (numpy, lru-cached -> constant on hot path)
# ---------------------------------------------------------------------------
def _build_interp_matrix_np(in_size, out_size, scale_src):
    """Dense (out_size, in_size) bilinear matrix, PyTorch align_corners=False.

    scale_src is the source step per destination pixel; PyTorch uses
    1/scale_factor (not in/out) when scale_factor is supplied.
    """
    dst = np.arange(out_size, dtype=np.float32)
    src = np.maximum((dst + 0.5) * np.float32(scale_src) - 0.5, np.float32(0.0))
    x0 = np.clip(np.floor(src).astype(np.int64), 0, in_size - 1)
    x1 = np.minimum(x0 + 1, in_size - 1)
    w1 = (src - x0).astype(np.float32)
    w0 = (1.0 - w1).astype(np.float32)
    m = np.zeros((out_size, in_size), np.float32)
    rows = np.arange(out_size)
    np.add.at(m, (rows, x0), w0)
    np.add.at(m, (rows, x1), w1)
    return m


@functools.lru_cache(maxsize=None)
def _composed_interp_matrix_np(size0, n_stages, multiplier):
    """Compose all per-stage interp matrices into one (size_n, size0) matrix."""
    m_total = None
    s = size0
    for _ in range(n_stages):
        s_out = int(math.floor(s * multiplier))
        assert s_out >= 1, "resize collapsed a spatial dimension to zero"
        m = _build_interp_matrix_np(s, s_out, 1.0 / multiplier)
        m_total = m if m_total is None else m @ m_total
        s = s_out
    return m_total, s


# ---------------------------------------------------------------------------
# Module
# ---------------------------------------------------------------------------
class SpatialRescalerPallas:
    def __init__(self, n_stages=1, method="bilinear", multiplier=0.5,
                 in_channels=3, out_channels=None, bias=False, key=None,
                 compute_dtype=None):
        assert n_stages >= 0
        assert method == "bilinear", "only bilinear is implemented"
        self.n_stages = n_stages
        self.multiplier = float(multiplier)
        self.remap_output = out_channels is not None
        # Optional low-precision resize fast path (e.g. jnp.bfloat16); None keeps
        # the input dtype.  Useful on v5e where the MXU has no fast f32 path.
        self.compute_dtype = compute_dtype
        self._w_cache = {}
        self.conv_weight = None
        self.conv_bias = None
        if self.remap_output:
            # nn.Conv2d(Cin, Cout, 1): kaiming-uniform weights, bound = 1/sqrt(Cin)
            key = jax.random.PRNGKey(42) if key is None else key
            k_w, k_b = jax.random.split(key)
            bound = 1.0 / math.sqrt(in_channels)
            self.conv_weight = jax.random.uniform(
                k_w, (out_channels, in_channels), jnp.float32,
                minval=-bound, maxval=bound)
            if bias:
                self.conv_bias = jax.random.uniform(
                    k_b, (out_channels,), jnp.float32, minval=-bound, maxval=bound)

    def _resize_weights(self, H, W, compute_dtype):
        key = (H, W, str(jnp.dtype(compute_dtype)))
        if key not in self._w_cache:
            wh_np, H_out = _composed_interp_matrix_np(H, self.n_stages, self.multiplier)
            ww_np, W_out = _composed_interp_matrix_np(W, self.n_stages, self.multiplier)
            wh = jnp.asarray(wh_np, dtype=compute_dtype)
            wwt = jnp.asarray(ww_np.T, dtype=compute_dtype)   # pre-transposed (W_in, W_out)
            self._w_cache[key] = (wh, wwt, H_out, W_out)
        return self._w_cache[key]

    def __call__(self, x):
        N, C, H, W = x.shape
        cd = jnp.dtype(self.compute_dtype) if self.compute_dtype is not None \
            else jnp.dtype(x.dtype)
        if self.n_stages > 0:
            wh, wwt, H_out, W_out = self._resize_weights(H, W, cd)
            x = _resize_pallas(x.reshape(N * C, H, W), wh, wwt, cd)
            x = x.reshape(N, C, H_out, W_out)
            H, W = H_out, W_out
        if self.remap_output:
            cout = self.conv_weight.shape[0]
            w = self.conv_weight.astype(x.dtype)
            if self.conv_bias is not None:
                b = self.conv_bias.astype(jnp.float32).reshape(cout, 1)
            else:
                b = jnp.zeros((cout, 1), jnp.float32)
            y = _channel_map_pallas(x.reshape(N, C, H * W), w, b)
            x = y.reshape(N, cout, H, W)
        return x

    def encode(self, x):
        return self(x)


# ---------------------------------------------------------------------------
# Pure-JAX reference (per-stage, for sanity-checking the kernels)
# ---------------------------------------------------------------------------
def _ref_forward(x, n_stages, multiplier, conv_weight, conv_bias=None):
    N, C, H, W = x.shape
    for _ in range(n_stages):
        H_out = int(math.floor(H * multiplier))
        W_out = int(math.floor(W * multiplier))
        wh = jnp.asarray(_build_interp_matrix_np(H, H_out, 1.0 / multiplier))
        ww = jnp.asarray(_build_interp_matrix_np(W, W_out, 1.0 / multiplier))
        x = jnp.einsum("oh,nchw->ncow", wh, x)
        x = jnp.einsum("pw,ncow->ncop", ww, x)
        H, W = H_out, W_out
    if conv_weight is not None:
        x = jnp.einsum("dc,nchw->ndhw", conv_weight, x)
        if conv_bias is not None:
            x = x + conv_bias[None, :, None, None]
    return x


if __name__ == "__main__":
    key = jax.random.PRNGKey(0)
    k_x, k_w, k_x3 = jax.random.split(key, 3)

    N, C_in, H, W = 2, 4, 16, 16
    C_out = 8
    x = jax.random.normal(k_x, (N, C_in, H, W), dtype=jnp.float32)

    # Config 1: one 2x downsample stage + 1x1 channel remap with bias.
    model = SpatialRescalerPallas(
        n_stages=1, method="bilinear", multiplier=0.5,
        in_channels=C_in, out_channels=C_out, bias=True, key=k_w)
    out = jax.block_until_ready(model(x))
    assert out.shape == (N, C_out, H // 2, W // 2), out.shape
    ref = _ref_forward(x, 1, 0.5, model.conv_weight, model.conv_bias)
    err = float(jnp.max(jnp.abs(out - ref)))
    assert jnp.allclose(out, ref, atol=1e-4, rtol=1e-4), err

    # Config 2: two composed stages, no channel remap.
    model2 = SpatialRescalerPallas(
        n_stages=2, method="bilinear", multiplier=0.5,
        in_channels=C_in, out_channels=None, bias=False)
    out2 = jax.block_until_ready(model2(x))
    assert out2.shape == (N, C_in, H // 4, W // 4), out2.shape
    ref2 = _ref_forward(x, 2, 0.5, None)
    err2 = float(jnp.max(jnp.abs(out2 - ref2)))
    assert jnp.allclose(out2, ref2, atol=1e-4, rtol=1e-4), err2

    # Config 3: sublane-unaligned spatial size (exercises the batched no-reshape path).
    x3 = jax.random.normal(k_x3, (2, 3, 12, 12), dtype=jnp.float32)
    model3 = SpatialRescalerPallas(
        n_stages=1, method="bilinear", multiplier=0.5,
        in_channels=3, out_channels=None, bias=False)
    out3 = jax.block_until_ready(model3(x3))
    assert out3.shape == (2, 3, 6, 6), out3.shape
    ref3 = _ref_forward(x3, 1, 0.5, None)
    err3 = float(jnp.max(jnp.abs(out3 - ref3)))
    assert jnp.allclose(out3, ref3, atol=1e-4, rtol=1e-4), err3

    print("KERNEL_OK")
</pallas_src>

<mosaic_0001>
module attributes {stable_mosaic.version = 11 : i64} {
  func.func @_resize_kernel(%arg0: i32, %arg1: memref<2x16x16xf32, #tpu.memory_space<vmem>>, %arg2: memref<8x16xf32, #tpu.memory_space<vmem>>, %arg3: memref<16x8xf32, #tpu.memory_space<vmem>>, %arg4: memref<2x8x8xf32, #tpu.memory_space<vmem>>) attributes {dimension_semantics = [#tpu.dimension_semantics<parallel>], iteration_bounds = array<i64: 4>, scalar_prefetch = 0 : i64, scratch_operands = 0 : i64, tpu.core_type = #tpu.core_type<tc>, window_params = [{transform_indices = @transform_0, window_bounds = array<i64: 2, 16, 16>}, {pipeline_mode = #tpu.pipeline_mode<synchronous>, transform_indices = @transform_1, window_bounds = array<i64: 8, 16>}, {pipeline_mode = #tpu.pipeline_mode<synchronous>, transform_indices = @transform_2, window_bounds = array<i64: 16, 8>}, {transform_indices = @transform_3, window_bounds = array<i64: 2, 8, 8>}]} {
    %c0 = arith.constant 0 : index
    %c0_0 = arith.constant 0 : index
    %c0_1 = arith.constant 0 : index
    %0 = vector.load %arg1[%c0, %c0_0, %c0_1] : memref<2x16x16xf32, #tpu.memory_space<vmem>>, vector<2x16x16xf32>
    %c0_2 = arith.constant 0 : index
    %c0_3 = arith.constant 0 : index
    %1 = vector.load %arg3[%c0_2, %c0_3] : memref<16x8xf32, #tpu.memory_space<vmem>>, vector<16x8xf32>
    %c0_4 = arith.constant 0 : index
    %c0_5 = arith.constant 0 : index
    %2 = vector.load %arg2[%c0_4, %c0_5] : memref<8x16xf32, #tpu.memory_space<vmem>>, vector<8x16xf32>
    %3 = vector.shape_cast %0 : vector<2x16x16xf32> to vector<32x16xf32>
    %cst = arith.constant dense<0.000000e+00> : vector<32x8xf32>
    %4 = tpu.matmul %3, %1, %cst {dimension_numbers = #tpu.dot_dimension_numbers<[1], [0], [0], [1], [0, 0, 1, 1], [], []>} : vector<32x16xf32>, vector<16x8xf32>, vector<32x8xf32> -> vector<32x8xf32>
    %5 = vector.shape_cast %4 : vector<32x8xf32> to vector<2x16x8xf32>
    %6 = vector.shape_cast %2 : vector<8x16xf32> to vector<1x8x16xf32>
    %7 = vector.broadcast %6 : vector<1x8x16xf32> to vector<2x8x16xf32>
    %cst_6 = arith.constant dense<0.000000e+00> : vector<2x8x8xf32>
    %8 = tpu.matmul %7, %5, %cst_6 {dimension_numbers = #tpu.dot_dimension_numbers<[2], [1], [1], [2], [0, 0, 0, 1, 1, 2], [0], [0]>} : vector<2x8x16xf32>, vector<2x16x8xf32>, vector<2x8x8xf32> -> vector<2x8x8xf32>
    %c0_7 = arith.constant 0 : index
    %c0_8 = arith.constant 0 : index
    %c0_9 = arith.constant 0 : index
    %9 = vector.load %arg4[%c0_7, %c0_8, %c0_9] : memref<2x8x8xf32, #tpu.memory_space<vmem>>, vector<2x8x8xf32>
    tpu.vector_store %arg4[%c0_7, %c0_8, %c0_9], %8 {strides = array<i32>} : memref<2x8x8xf32, #tpu.memory_space<vmem>>, vector<2x8x8xf32>,
    return
  }
  func.func @transform_0(%arg0: i32) -> (i32, i32, i32) {
    %c0_i32 = arith.constant 0 : i32
    %c0_i32_0 = arith.constant 0 : i32
    %c0_i32_1 = arith.constant 0 : i32
    return %arg0, %c0_i32, %c0_i32_0 : i32, i32, i32
  }
  func.func @transform_1(%arg0: i32) -> (i32, i32) {
    %c0_i32 = arith.constant 0 : i32
    %c0_i32_0 = arith.constant 0 : i32
    %c0_i32_1 = arith.constant 0 : i32
    return %c0_i32, %c0_i32_0 : i32, i32
  }
  func.func @transform_2(%arg0: i32) -> (i32, i32) {
    %c0_i32 = arith.constant 0 : i32
    %c0_i32_0 = arith.constant 0 : i32
    %c0_i32_1 = arith.constant 0 : i32
    return %c0_i32, %c0_i32_0 : i32, i32
  }
  func.func @transform_3(%arg0: i32) -> (i32, i32, i32) {
    %c0_i32 = arith.constant 0 : i32
    %c0_i32_0 = arith.constant 0 : i32
    %c0_i32_1 = arith.constant 0 : i32
    return %arg0, %c0_i32, %c0_i32_0 : i32, i32, i32
  }
}

</mosaic_0001>

<bundles_post_ra>
// kernel: tpu_custom_call.1
= control target key start
LH: loop header
LB: loop body
LE: loop exit
PB: predicated region body
PF: predicated region fallthrough
CT: control target
= control target key end

     0   :  { %8 = vsyncpa [#allocation3], 0  ;;  %s956_s0 = inlined_call_operand.hbm [shape: f32[8,16,16], index: 0, kind: input, shape index: {}]   ;;  %s957_s1 = inlined_call_operand.vmem [shape: f32[8,16], index: 1, kind: input, shape index: {}]   ;;  %s958_s2 = inlined_call_operand.vmem [shape: f32[16,8], index: 2, kind: input, shape index: {}]   ;;  %s959_s3 = inlined_call_operand.hbm [shape: f32[8,8,8], index: 3, kind: output, shape index: {}]  }
   0x1   :  { %10 = vsyncpa [#allocation3 + $0x1], 0 }
   0x2   :  { %11 = vsyncpa [#allocation4], 0 }
   0x3   :  { %13 = vsyncpa [#allocation4 + $0x1], 0  ;;  %s780_s12 = smov 0   ;;  %s782_s13 = smov 0  }
   0x4   :  { %s784_s14 = smov 0   ;;  %s786_s15 = smov 0  }
   0x5 LB: > { %s801_s16 = sadd.s32 4294967295, %s749_s15   ;;  %s530_s17 = sadd.s32 4294967294, %s749_s15   ;;  %s749_s15 = sphi %s786_s15, %s971_s15   ;;  %s745_s14 = sphi %s784_s14, %s970_s14   ;;  %s741_s13 = sphi %s782_s13, %s969_s13   ;;  %s737_s12 = sphi %s780_s12, %s968_s12  }
   0x6   : > { %s805_s18 = sadd.s32 1, %s749_s15   ;;  %s26_s19 = sadd.s32 1, %s745_s14 }
   0x7   : > { %s23_s20 = ssub.s32 %s749_s15, %s805_s18  ;;  %p33_p0 = scmp.ne.s32.totalorder %s745_s14, %s741_s13 }
   0x8   : > { %p24_p1 = scmp.eq.s32.totalorder %s23_s20, 0  ;;  %p34_p2 = scmp.eq.s32.totalorder %s749_s15, 0 }
   0x9   : > { %p39_p3 = scmp.ne.s32.totalorder %s741_s13, %s737_s12  ;;  %p40_p4 = scmp.eq.s32.totalorder %s801_s16, 0 }
   0xa   : > { %s817_s21 = scalar_select %p24_p1, %s745_s14, %s26_s19  }
   0xb   : > { %p819_p5 = por %p34_p2, %p33_p0  ;;  %p823_p6 = por %p40_p4, %p39_p3 }
   0xc   : > { %p105_p7 = scmp.eq.s32.totalorder %s801_s16, 3  ;;  %p111_p8 = scmp.eq.s32.totalorder %s530_s17, 3 }
   0xd   : > { %p612_p9 = scmp.lt.s32.totalorder %s749_s15, 4  ;;  %s137_s26 = sand.u32 1, %s745_s14  }
   0xe   : > { %p829_p10 = por %p105_p7, %p33_p0  ;;  %p833_p11 = por %p111_p8, %p39_p3 }
   0xf   : > { %s552_s27 = sshll.u32 %s749_s15, 9  ;;  %s533_s28 = sshll.u32 %s137_s26, 5 }
  0x10   : > { %s963_s24 = scalar_select %p829_p10, 1, 0 }
  0x11   : > { %s964_s25 = scalar_select %p833_p11, 1, 0 }
  0x12   : > { %s842_s4 = scalar_lea.hbm %s956_s0, %s552_s27  ;;  %s141_s5 = scalar_lea.vmem [#allocation2], %s533_s28 }
  0x13   : > { %s149_s6 = sshll.u32 %s141_s5, 4  ;;  %p846_p12 = pnand %p612_p9, %p819_p5  ;;  %s850_s6 = int_to_ptr.vmem [resolvable:$true] %s149_s6 }
  0x14   : > { %s852_s8 = scalar_lea.sflag [#allocation3], %s137_s26  ;;  %s653_s9 = scalar_lea.hbm %s842_s4, 512 }
  0x15   : > { %p654_p13 = scmp.ne.s32.totalorder %s842_s4, %s653_s9  ;;  %p655_p0 = pneg %p846_p12 }
  0x16   : > { %s658_s17 = scalar_lea.hbm %s956_s0, 2048  ;;  %p659_p3 = scmp.lt.u32.totalorder %s842_s4, %s956_s0 }
  0x17   : > { %p656_p1 = pnand %p655_p0, %p654_p13  ;;  %p660_p4 = scmp.lt.u32.totalorder %s658_s17, %s653_s9 }
  0x18   : > { %p662_p7 = scmp.lt.u32.totalorder %s653_s9, %s842_s4 }
  0x19   : > { %p657_p2 = pneg %p656_p1  ;;  %p661_p5 = por %p660_p4, %p659_p3 }
  0x1b   : > { %p663_p8 = por %p662_p7, %p661_p5 }
  0x1d   : > { %p664_p9 = pnand %p663_p8, %p657_p2 }
  0x1f   : > { %667 = shalt.err (!%p664_p9)
}
  0x20   : > { %s668_s22 = scalar_lea.vmem %s850_s6, 512  ;;  %s751_s26 = smov [#allocation2]  }
  0x21   : > { %p669_p13 = scmp.ne.s32.totalorder %s850_s6, %s668_s22  ;;  %s673_s27 = sshll.u32 %s751_s26, 4  ;;  %s674_s27 = int_to_ptr.vmem [resolvable:$false] %s673_s27 }
  0x22   : > { %s675_s28 = scalar_lea.vmem %s674_s27, 1024  ;;  %p676_p10 = scmp.lt.s32.totalorder %s850_s6, %s674_s27 }
  0x23   : > { %p671_p1 = pnand %p669_p13, %p655_p0  ;;  %p677_p3 = scmp.lt.s32.totalorder %s675_s28, %s668_s22 }
  0x25   : > { %p672_p11 = pneg %p671_p1  ;;  %p678_p4 = por %p677_p3, %p676_p10 }
  0x27   : > { %p679_p5 = pnand %p678_p4, %p672_p11 }
  0x29   : > { %682 = shalt.err (!%p679_p5)
}
  0x2a   : > { %s752_s29 = smov 128   ;;  %s753_s30 = smov 8  }
  0x2b   : > { %607 = dma.hbm_to_vmem [thread:$0]  (!%p846_p12), %s842_s4, 512, %s850_s6, %s852_s8, %s752_s29, %s752_s29, %s753_s30  }
  0x2c   : > { %p537_p0 = scmp.ge.s32.totalorder %s749_s15, 1  ;;  %p157_p2 = scmp.lt.s32.totalorder %s749_s15, 5 }
  0x2e   : > { %p158_p7 = pnand %p537_p0, %p157_p2 }
  0x2f   : > { %s883_s5 = sand.u32 (!%p158_p7), 1, %s741_s13  }
  0x30   : > { %161 = sbr.rel (%p158_p7) target bundleno = 512 (0x200), region = 32  ;;  %s538_s9 = sshll.u32 (!%p158_p7), %s883_s5, 5 }
  0x31   : > { %s164_s10 = scalar_lea.sflag (!%p158_p7), [#allocation3], %s883_s5  ;;  %s167_s11 = scalar_lea.vmem (!%p158_p7), [#allocation2], %s538_s9 }
  0x37   : > { %728 = dma.done.wait (%p823_p6), %s164_s10, 512  }
  0x38   : > { %730 = vsyncadd (%p823_p6), %s164_s10, 4294966784  ;;  %vm199_vm0 = vcmask 130048   ;;  %v196_v0 = vld [vmem:[%s958_s2] sm:$0xff]  ;;  %v197_v1 = vld [vmem:[%s958_s2 + $0x8] sm:$0xff]  ;;  %v754_v7 = vmov 0.0|0.0   ;;  %vm755_vm1 = vmmov 0  }
  0x39   : > { %v192_v2 = vld [vmem:[%s167_s11] sm:$0xff]  ;;  %v590_v3 = vpack.c.bf16 %v197_v1, %v196_v0  ;;  %v193_v4 = vld [vmem:[%s167_s11 + $0x8] sm:$0xff]  ;;  %v194_v5 = vld [vmem:[%s167_s11 + $0x10] sm:$0xff]  ;;  %594 = vmatprep.subr.bf16.mxu1 %v754_v7  ;;  %v756_v8 = vmov 0.0   ;;  %s539_s19 = sshll.u32 %s883_s5, 4  ;;  %vm440_vm2 = vcmask 64512  }
  0x3a   : > { %570 = vmatprep.mubr.msk.f32.mxu0 %vm199_vm0, %v192_v2  ;;  %v195_v6 = vld [vmem:[%s167_s11 + $0x18] sm:$0xff]  ;;  %580 = vmatprep.mubr.msk.f32.mxu1 %vm755_vm1, %v756_v8  ;;  %v198_v13 = vld [vmem:[%s957_s1] sm:$0xff]  ;;  %s189_s20 = scalar_lea.vmem [#allocation5], %s539_s19  ;;  %s553_s26 = sshll.u32 %s801_s16, 8 }
  0x3b   : > { %591 = vmatprep.subr.bf16.mxu0 %v590_v3  ;;  %s457_s22 = sshll.u32 %s189_s20, 4  ;;  %s913_s29 = scalar_lea.hbm %s959_s3, %s553_s26  ;;  %s908_s22 = int_to_ptr.vmem [resolvable:$true] %s457_s22 }
  0x3c   : > { %593 = vmatpush3.bf16.msra.mxu0 %v590_v3  ;;  %s444_s30 = scalar_lea.sflag [#allocation4], %s883_s5  ;;  %s683_s9 = scalar_lea.vmem %s908_s22, 256 }
  0x3d   : > { %p684_p6 = scmp.ne.s32.totalorder %s908_s22, %s683_s9  ;;  %p966_p10 = scmp.ne.s32.totalorder %s963_s24, 0 }
  0x3e   : > { %s757_s16 = smov [#allocation5]  }
  0x3f   : > { %571 = vmatmul.mubr.msk.f32.vlgmr.msra.gmra.mrb[0].mxu0 %vm199_vm0, %v193_v4  ;;  %p685_p11 = pnand %p684_p6, %p966_p10  ;;  %s687_s10 = sshll.u32 %s757_s16, 4  ;;  %s688_s10 = int_to_ptr.vmem [resolvable:$false] %s687_s10 }
  0x40   : > { %573 = vmatprep.mubr.msk.f32.mxu0 %vm199_vm0, %v194_v5  ;;  %s689_s11 = scalar_lea.vmem %s688_s10, 512  ;;  %p690_p8 = scmp.lt.s32.totalorder %s908_s22, %s688_s10 }
  0x41   : > { %p686_p12 = pneg %p685_p11  ;;  %p691_p9 = scmp.lt.s32.totalorder %s689_s11, %s683_s9 }
  0x43   : > { %574 = vmatmul.mubr.msk.f32.gmra.mrb[2].mxu0 %vm199_vm0, %v195_v6  ;;  %p692_p13 = por %p691_p9, %p690_p8 }
  0x45   : > { %p693_p1 = pnand %p692_p13, %p686_p12 }
 0x112   : > { %v572_v9 = vpop.f32.mrb[0].mxu0 }
 0x113   : > { %v278_v10 = vpop.f32.mrb[1].mxu0 }
 0x114   : > { %v595_v11 = vpack.c.bf16 %v572_v9, %v278_v10 }
 0x116   : > { %v575_v12 = vpop.f32.mrb[2].mxu0  ;;  %596 = vmatpush3.bf16.msra.mxu1 %v595_v11 }
 0x117   : > { %v288_v14 = vpop.f32.mrb[3].mxu0  ;;  %597 = vmatprep.subr.bf16.mxu1 %v754_v7 }
 0x118   : > { %v598_v15 = vpack.c.bf16 %v575_v12, %v288_v14 }
 0x119   : > { %581 = vmatmul.mubr.msk.f32.vlgmr.msra.gmra.mrb[0].mxu1 %vm199_vm0, %v198_v13 }
 0x11a   : > { %599 = vmatpush3.bf16.msra.mxu1 %v598_v15  ;;  %587 = vmatprep.mubr.msk.f32.mxu1 %vm755_vm1, %v756_v8 }
 0x11d   : > { %588 = vmatmul.mubr.msk.f32.vlgmr.msra.gmra.mrb[2].mxu1 %vm199_vm0, %v198_v13 }
 0x1ec   : > { %v366_v16 = vpop.f32.mrb[0].mxu1 }
 0x1ed   : > { %441 = vst.msk [vmem:[%s189_s20] sm:$0xff] %vm440_vm2, %v366_v16  ;;  %v582_v17 = vpop.f32.mrb[1].mxu1 }
 0x1f0   : > { %v436_v18 = vpop.f32.mrb[2].mxu1 }
 0x1f1   : > { %442 = vst.msk [vmem:[%s189_s20 + $0x8] sm:$0xff] %vm440_vm2, %v436_v18  ;;  %v589_v19 = vpop.f32.mrb[3].mxu1 }
 0x1f2   : > { %696 = shalt.err (!%p693_p1)
}
 0x1f3   : > { %s697_s4 = scalar_lea.hbm %s913_s29, 256  ;;  %s701_s8 = scalar_lea.hbm %s959_s3, 1024 }
 0x1f4   : > { %p698_p3 = scmp.ne.s32.totalorder %s913_s29, %s697_s4  ;;  %p702_p0 = scmp.lt.u32.totalorder %s913_s29, %s959_s3 }
 0x1f5   : > { %p703_p2 = scmp.lt.u32.totalorder %s701_s8, %s697_s4  ;;  %p705_p6 = scmp.lt.u32.totalorder %s697_s4, %s913_s29 }
 0x1f6   : > { %p699_p4 = pnand %p698_p3, %p966_p10 }
 0x1f7   : > { %p704_p7 = por %p703_p2, %p702_p0 }
 0x1f8   : > { %p700_p5 = pneg %p699_p4 }
 0x1f9   : > { %p706_p11 = por %p705_p6, %p704_p7 }
 0x1fb   : > { %p707_p12 = pnand %p706_p11, %p700_p5 }
 0x1fd   : > { %710 = shalt.err (!%p707_p12)
}
 0x1fe   : > { %s758_s19 = smov 128   ;;  %s759_s20 = smov 8  }
 0x1ff   : > { %602 = dma.vmem_to_hbm [thread:$0]  (%p966_p10), %s908_s22, 256, %s913_s29, %s444_s30, %s758_s19, %s758_s19, %s759_s20  }
 0x200 PF: > { %p613_p8 = scmp.ge.s32.totalorder %s749_s15, 2  ;;  %s472_s26 = sand.u32 1, %s737_s12  }
 0x201   : > { %p967_p9 = scmp.ne.s32.totalorder %s964_s25, 0  ;;  %s473_s27 = scalar_lea.sflag [#allocation4], %s472_s26 }
 0x203   : > { %p609_p13 = pnand %p613_p8, %p967_p9 }
 0x205   : > { %732 = dma.done.wait (!%p609_p13), %s473_s27, 256  }
 0x206   : > { %734 = vsyncadd (!%p609_p13), %s473_s27, 4294967040  ;;  %p16_p1 = scmp.ge.s32.totalorder %s805_s18, 6   ;;  %s968_s12 = smov %s741_s13 }
 0x207   : > { %s969_s13 = smov %s745_s14  ;;  %s970_s14 = smov %s817_s21 }
 0x208   : > { %s971_s15 = smov %s805_s18  ;;  %18 = sbr.rel (!%p16_p1) target bundleno = 5 (0x5), region = 77 }
 0x20f   :  { %478 = vsyncpa [#allocation3], 1 }
 0x210   :  { %480 = vsyncpa [#allocation3 + $0x1], 1 }
 0x211   :  { %481 = vsyncpa [#allocation4], 1 }
 0x212   :  { %483 = vsyncpa [#allocation4 + $0x1], 1 }

</bundles_post_ra>
